<compile_context>
chip_gen: v7x
topology: tpu7x:2x2x1
jax: 0.10.0
libtpu: 0.0.40
codegen_flags: <defaults>
</compile_context>

<pallas_src>
import jax
import jax.numpy as jnp
from jax.experimental import pallas as pl
from jax.experimental.pallas import tpu as pltpu


def _se_kernel(x_ref, w1t_ref, w2t_ref, o_ref):
    # x_ref:   (Tn, C, HW)  batch tile, original dtype
    # w1t_ref: (C, R)       f32, conv1 weight transposed, pre-scaled by 1/HW
    # w2t_ref: (R, C)       f32, conv2 weight transposed
    x = x_ref[...]                                              # (Tn, C, HW)

    # Global average pool. 1/HW is folded into w1t, so this is a pure sum.
    # Accumulate in f32 for accuracy (only the reduce path is upcast).
    pooled = jnp.sum(x.astype(jnp.float32), axis=-1)            # (Tn, C)

    # Conv1x1 C->R (no bias), lane-dense batched matmul.
    h = jnp.dot(pooled, w1t_ref[...],
                preferred_element_type=jnp.float32)             # (Tn, R)
    h = h * jax.nn.sigmoid(h)                                   # SiLU

    # Conv1x1 R->C (no bias).
    s = jnp.dot(h, w2t_ref[...],
                preferred_element_type=jnp.float32)             # (Tn, C)

    # Sigmoid gate, cast once to the input dtype, broadcast over spatial.
    gate = jax.nn.sigmoid(s).astype(x.dtype)                    # (Tn, C)
    o_ref[...] = x * gate[:, :, None]


def squeeze_excitation(x, w1, w2, *, block_budget_bytes=8 * 1024 * 1024):
    """x: (N, C, H, W); w1: (R, C); w2: (C, R). Returns (N, C, H, W)."""
    N, C, H, W = x.shape
    R = w1.shape[0]
    HW = H * W
    x_flat = x.reshape(N, C, HW)

    # ---- batch tiling, budgeted against VMEM (v7x has only 64 MiB) --------
    itemsize = jnp.dtype(x.dtype).itemsize
    per_image_bytes = C * HW * itemsize
    cap = max(1, block_budget_bytes // per_image_bytes)
    tile_n = 1
    for d in range(1, min(N, cap) + 1):        # largest divisor of N <= cap
        if N % d == 0:
            tile_n = d
    # TODO(synk): for very large C*HW (early-stage layers) on v7x, add an
    # HW-tiled two-pass fallback instead of forcing tile_n=1.

    # ---- weight prep: transpose, cast once, fold 1/HW into w1 -------------
    w1t = (w1.astype(jnp.float32) * (1.0 / float(HW))).T        # (C, R)
    w2t = w2.astype(jnp.float32).T                              # (R, C)

    block_bytes = tile_n * per_image_bytes
    weight_bytes = 2 * C * R * 4
    # 2x in + 2x out double-buffered blocks + weights + slack, capped for v7x.
    vmem_limit = int(min(
        48 * 1024 * 1024,
        max(16 * 1024 * 1024,
            4 * block_bytes + 2 * weight_bytes + 2 * 1024 * 1024),
    ))

    out = pl.pallas_call(
        _se_kernel,
        out_shape=jax.ShapeDtypeStruct((N, C, HW), x.dtype),
        grid_spec=pltpu.PrefetchScalarGridSpec(
            num_scalar_prefetch=0,
            grid=(N // tile_n,),
            in_specs=[
                pl.BlockSpec((tile_n, C, HW), lambda n: (n, 0, 0)),
                pl.BlockSpec((C, R), lambda n: (0, 0)),
                pl.BlockSpec((R, C), lambda n: (0, 0)),
            ],
            out_specs=pl.BlockSpec((tile_n, C, HW), lambda n: (n, 0, 0)),
        ),
        compiler_params=pltpu.CompilerParams(
            dimension_semantics=("parallel",),
            vmem_limit_bytes=vmem_limit,
        ),
    )(x_flat, w1t, w2t)

    return out.reshape(N, C, H, W)


def _reference(x, w1, w2):
    pooled = jnp.mean(x, axis=(2, 3), keepdims=True)            # (N, C, 1, 1)
    h = jnp.einsum("rc,nc->nr", w1, pooled[:, :, 0, 0])         # (N, R)
    h = h * jax.nn.sigmoid(h)
    s = jnp.einsum("cr,nr->nc", w2, h)                          # (N, C)
    gate = jax.nn.sigmoid(s)[:, :, None, None]                  # (N, C, 1, 1)
    return x * gate


if __name__ == "__main__":
    N, C, H, W = 2, 4, 16, 16
    R = 2  # reduced_dim

    key = jax.random.PRNGKey(0)
    kx, k1, k2 = jax.random.split(key, 3)

    x = jax.random.normal(kx, (N, C, H, W), dtype=jnp.float32)
    # conv weights: PyTorch shapes (R, C, 1, 1) / (C, R, 1, 1) squeezed to 2D.
    w1 = jax.random.normal(k1, (R, C), dtype=jnp.float32) * 0.1
    w2 = jax.random.normal(k2, (C, R), dtype=jnp.float32) * 0.1

    y = squeeze_excitation(x, w1, w2)
    jax.block_until_ready(y)

    y_ref = _reference(x, w1, w2)
    assert jnp.allclose(y, y_ref, atol=1e-5, rtol=1e-5), "mismatch vs reference"

    print("KERNEL_OK")
</pallas_src>

<mosaic_0001>
module attributes {stable_mosaic.version = 11 : i64} {
  func.func @_se_kernel(%arg0: i32, %arg1: memref<2x4x256xf32, #tpu.memory_space<vmem>>, %arg2: memref<4x2xf32, #tpu.memory_space<vmem>>, %arg3: memref<2x4xf32, #tpu.memory_space<vmem>>, %arg4: memref<2x4x256xf32, #tpu.memory_space<vmem>>) attributes {dimension_semantics = [#tpu.dimension_semantics<parallel>], iteration_bounds = array<i64: 1>, scalar_prefetch = 0 : i64, scratch_operands = 0 : i64, tpu.core_type = #tpu.core_type<tc>, window_params = [{transform_indices = @transform_0, window_bounds = array<i64: 2, 4, 256>}, {pipeline_mode = #tpu.pipeline_mode<synchronous>, transform_indices = @transform_1, window_bounds = array<i64: 4, 2>}, {pipeline_mode = #tpu.pipeline_mode<synchronous>, transform_indices = @transform_2, window_bounds = array<i64: 2, 4>}, {transform_indices = @transform_3, window_bounds = array<i64: 2, 4, 256>}]} {
    %c0 = arith.constant 0 : index
    %c0_0 = arith.constant 0 : index
    %c0_1 = arith.constant 0 : index
    %0 = vector.load %arg1[%c0, %c0_0, %c0_1] : memref<2x4x256xf32, #tpu.memory_space<vmem>>, vector<2x4x256xf32>
    %cst = arith.constant dense<0.000000e+00> : vector<2x4xf32>
    %1 = vector.multi_reduction <add>, %0, %cst [2] : vector<2x4x256xf32> to vector<2x4xf32>
    %c0_2 = arith.constant 0 : index
    %c0_3 = arith.constant 0 : index
    %2 = vector.load %arg2[%c0_2, %c0_3] : memref<4x2xf32, #tpu.memory_space<vmem>>, vector<4x2xf32>
    %cst_4 = arith.constant dense<0.000000e+00> : vector<2x2xf32>
    %3 = tpu.matmul %1, %2, %cst_4 {dimension_numbers = #tpu.dot_dimension_numbers<[1], [0], [0], [1], [0, 0, 1, 1], [], []>} : vector<2x4xf32>, vector<4x2xf32>, vector<2x2xf32> -> vector<2x2xf32>
    %4 = arith.negf %3 : vector<2x2xf32>
    %5 = math.exp %4 : vector<2x2xf32>
    %cst_5 = arith.constant 1.000000e+00 : f32
    %6 = vector.broadcast %cst_5 : f32 to vector<2x2xf32>
    %7 = arith.addf %6, %5 : vector<2x2xf32>
    %8 = arith.divf %6, %7 : vector<2x2xf32>
    %9 = arith.mulf %3, %8 : vector<2x2xf32>
    %c0_6 = arith.constant 0 : index
    %c0_7 = arith.constant 0 : index
    %10 = vector.load %arg3[%c0_6, %c0_7] : memref<2x4xf32, #tpu.memory_space<vmem>>, vector<2x4xf32>
    %cst_8 = arith.constant dense<0.000000e+00> : vector<2x4xf32>
    %11 = tpu.matmul %9, %10, %cst_8 {dimension_numbers = #tpu.dot_dimension_numbers<[1], [0], [0], [1], [0, 0, 1, 1], [], []>} : vector<2x2xf32>, vector<2x4xf32>, vector<2x4xf32> -> vector<2x4xf32>
    %12 = arith.negf %11 : vector<2x4xf32>
    %13 = math.exp %12 : vector<2x4xf32>
    %cst_9 = arith.constant 1.000000e+00 : f32
    %14 = vector.broadcast %cst_9 : f32 to vector<2x4xf32>
    %15 = arith.addf %14, %13 : vector<2x4xf32>
    %16 = arith.divf %14, %15 : vector<2x4xf32>
    %17 = vector.shape_cast %16 : vector<2x4xf32> to vector<2x4x1xf32>
    %18 = vector.broadcast %17 : vector<2x4x1xf32> to vector<2x4x256xf32>
    %19 = arith.mulf %0, %18 : vector<2x4x256xf32>
    %c0_10 = arith.constant 0 : index
    %c0_11 = arith.constant 0 : index
    %c0_12 = arith.constant 0 : index
    %20 = vector.load %arg4[%c0_10, %c0_11, %c0_12] : memref<2x4x256xf32, #tpu.memory_space<vmem>>, vector<2x4x256xf32>
    tpu.vector_store %arg4[%c0_10, %c0_11, %c0_12], %19 {strides = array<i32>} : memref<2x4x256xf32, #tpu.memory_space<vmem>>, vector<2x4x256xf32>,
    return
  }
  func.func @transform_0(%arg0: i32) -> (i32, i32, i32) {
    %c0_i32 = arith.constant 0 : i32
    %c0_i32_0 = arith.constant 0 : i32
    %c0_i32_1 = arith.constant 0 : i32
    return %arg0, %c0_i32, %c0_i32_0 : i32, i32, i32
  }
  func.func @transform_1(%arg0: i32) -> (i32, i32) {
    %c0_i32 = arith.constant 0 : i32
    %c0_i32_0 = arith.constant 0 : i32
    %c0_i32_1 = arith.constant 0 : i32
    return %c0_i32, %c0_i32_0 : i32, i32
  }
  func.func @transform_2(%arg0: i32) -> (i32, i32) {
    %c0_i32 = arith.constant 0 : i32
    %c0_i32_0 = arith.constant 0 : i32
    %c0_i32_1 = arith.constant 0 : i32
    return %c0_i32, %c0_i32_0 : i32, i32
  }
  func.func @transform_3(%arg0: i32) -> (i32, i32, i32) {
    %c0_i32 = arith.constant 0 : i32
    %c0_i32_0 = arith.constant 0 : i32
    %c0_i32_1 = arith.constant 0 : i32
    return %arg0, %c0_i32, %c0_i32_0 : i32, i32, i32
  }
}

</mosaic_0001>

<bundles_post_ra>
// kernel: tpu_custom_call.1
= control target key start
LH: loop header
LB: loop body
LE: loop exit
PB: predicated region body
PF: predicated region fallthrough
CT: control target
= control target key end

     0   :  { %8 = vsyncpa [#allocation3], 0  ;;  %s449_s0 = inlined_call_operand.hbm [shape: f32[2,4,256], index: 0, kind: input, shape index: {}]   ;;  %s450_s1 = inlined_call_operand.vmem [shape: f32[4,2], index: 1, kind: input, shape index: {}]   ;;  %s451_s2 = inlined_call_operand.vmem [shape: f32[2,4], index: 2, kind: input, shape index: {}]   ;;  %s452_s3 = inlined_call_operand.hbm [shape: f32[2,4,256], index: 3, kind: output, shape index: {}]  }
   0x1   :  { %9 = vsyncpa [#allocation4], 0  ;;  %s369_s12 = smov [#allocation2]   ;;  %s321_s16 = scalar_lea.hbm %s449_s0, 256 }
   0x2   :  { %s15_s13 = sshll.u32 %s369_s12, 4  ;;  %p322_p0 = scmp.ne.s32.totalorder %s449_s0, %s321_s16  ;;  %s16_s13 = int_to_ptr.vmem [resolvable:$true] %s15_s13 }
   0x3   :  { %p325_p1 = scmp.lt.u32.totalorder %s321_s16, %s449_s0 }
   0x5   :  { %p327_p2 = pnand %p325_p1, %p322_p0 }
   0x7   :  { %330 = shalt.err (!%p327_p2)
}
   0x8   :  { %s331_s21 = scalar_lea.vmem %s16_s13, 256  ;;  %p336_p4 = scmp.lt.s32.totalorder %s16_s13, %s16_s13 }
   0x9   :  { %p332_p3 = scmp.ne.s32.totalorder %s16_s13, %s331_s21  ;;  %p337_p5 = scmp.lt.s32.totalorder %s331_s21, %s331_s21 }
   0xb   :  { %p338_p6 = por %p337_p5, %p336_p4 }
   0xd   :  { %p339_p7 = pnand %p338_p6, %p332_p3 }
   0xf   :  { %342 = shalt.err (!%p339_p7)
}
  0x10   :  { %s370_s22 = smov 128   ;;  %s371_s23 = smov 8  }
  0x11   :  { %21 = dma.hbm_to_vmem [thread:$0]  %s449_s0, 256, %s16_s13, [#allocation3], %s370_s22, %s370_s22, %s371_s23  }
  0x12   :  { %365 = dma.done.wait [#allocation3], 256  }
  0x13   :  { %366 = vsyncadd [#allocation3], 4294967040  ;;  %vm37_vm0 = vcmask 1043456   ;;  %v411_v0 = vld [vmem:[#allocation2] sm:$0xff]  ;;  %v413_v1 = vld [vmem:[#allocation2 + $0x8] sm:$0xff]  ;;  %v372_v11 = vmov 0.0   ;;  %v51_v12 = vlaneseq }
  0x14   :  { %v33_v2 = vcombine.high %v411_v0, %v411_v0  ;;  %v38_v3 = vsel %vm37_vm0, %v411_v0, 0.0  ;;  %v34_v4 = vcombine.high %v413_v1, %v413_v1  ;;  %v43_v6 = vsel %vm37_vm0, %v413_v1, 0.0  ;;  %v48_v10 = vld [vmem:[%s450_s1] sm:$0xf]  ;;  %294 = vmatprep.subr.mxu0 %v372_v11  ;;  %299 = vmatprep.subr.mxu1 %v372_v11 }
  0x15   :  { %vm373_vm1 = vmmov 0   ;;  %295 = vmatpush3.msk.msra.mxu0 %vm37_vm0, %v48_v10  ;;  %v52_v13 = vand.u32 127, %v51_v12  ;;  %v54_v14 = vshrl.u32 %v51_v12, 7  ;;  %vm61_vm2 = vcmask 1041409   ;;  %v146_v21 = vld [vmem:[%s451_s2] sm:$0x3] }
  0x16   :  { %v39_v5 = vsel %vm37_vm0, %v33_v2, 0.0  ;;  %v44_v7 = vsel %vm37_vm0, %v34_v4, 0.0  ;;  %296 = vmatprep.mubr.msk.f32.mxu0 %vm373_vm1, %v372_v11  ;;  %301 = vmatprep.mubr.msk.f32.mxu1 %vm373_vm1, %v372_v11  ;;  %vm63_vm3 = vcmask 31744   ;;  %vm151_vm4 = vcmask 1041408   ;;  %s375_s2 = smov [#allocation5]  }
  0x17   :  { %v40_v8 = vadd.f32 %v39_v5, %v38_v3  ;;  %v45_v9 = vadd.f32 %v44_v7, %v43_v6  ;;  %v55_v16 = vsub.s32 %v52_v13, %v54_v14  ;;  %300 = vmatpush3.msk.msra.mxu1 %vm151_vm4, %v146_v21  ;;  %vm147_vm5 = vcmask 15360   ;;  %s272_s28 = sshll.u32 %s375_s2, 4  ;;  %s273_s28 = int_to_ptr.vmem [resolvable:$true] %s272_s28 }
  0x18   :  { %v233_v34 = vsub.s32 0, %v54_v14  ;;  %v240_v37 = vsub.s32 1, %v54_v14  ;;  %v374_v39 = vmov 839922192   ;;  %s343_s29 = scalar_lea.vmem %s273_s28, 256  ;;  %p348_p9 = scmp.lt.s32.totalorder %s273_s28, %s273_s28 }
  0x19   :  { %41 = vadd.xlane.f32.xlu0 %v40_v8  ;;  %v248_v40 = vunpack.c.l.s4 %v374_v39  ;;  %p344_p8 = scmp.ne.s32.totalorder %s273_s28, %s343_s29  ;;  %p349_p10 = scmp.lt.s32.totalorder %s343_s29, %s343_s29 }
  0x1b   :  { %v249_v41 = vunpack.c.0.s8 %v248_v40  ;;  %p350_p11 = por %p349_p10, %p348_p9 }
  0x1d   :  { %46 = vadd.xlane.f32.xlu0 %v45_v9  ;;  %v252_v42 = vsub.s32 %v249_v41, %v54_v14  ;;  %p351_p12 = pnand %p350_p11, %p344_p8 }
  0xa6   :  { %v42_v15 = vpop.xlane.xlu0 %41 }
  0xa7   :  { %v56_v18 = vrot.slane %v42_v15, %v55_v16 }
  0xaa   :  { %v47_v17 = vpop.xlane.xlu0 %46 }
  0xab   :  { %v60_v19 = vrot.slane %v47_v17, %v55_v16 }
  0xad   :  { %v62_v20 = vsel %vm61_vm2, %v60_v19, %v56_v18 }
  0xae   :  { %297 = vmatmul.mubr.msk.f32.vlgmr.msra.gmra.mrb[0].mxu0 %vm63_vm3, %v62_v20 }
 0x181   :  { %v135_v22 = vpop.f32.mrb[0].mxu0 }
 0x182   :  { %v286_v23 = vmul.f32 -1.442695, %v135_v22  ;;  %v298_v24 = vpop.f32.mrb[1].mxu0 }
 0x184   :  { %313 = vpow2.f32 %v286_v23 }
 0x18e   :  { %v314_v25 = vpop.eup %313 }
 0x18f   :  { %v142_v26 = vadd.f32 1.0, %v314_v25 }
 0x191   :  { %315 = vrcp.f32 %v142_v26 }
 0x19b   :  { %v316_v27 = vpop.eup %315 }
 0x19c   :  { %v145_v28 = vmul.f32 %v316_v27, %v135_v22 }
 0x19e   :  { %302 = vmatmul.mubr.msk.f32.vlgmr.msra.gmra.mrb[0].mxu1 %vm147_vm5, %v145_v28 }
 0x271   :  { %v221_v29 = vpop.f32.mrb[0].mxu1 }
 0x272   :  { %v289_v30 = vmul.f32 -1.442695, %v221_v29  ;;  %v303_v31 = vpop.f32.mrb[1].mxu1 }
 0x274   :  { %317 = vpow2.f32 %v289_v30 }
 0x27e   :  { %v318_v32 = vpop.eup %317 }
 0x27f   :  { %v228_v33 = vadd.f32 1.0, %v318_v32 }
 0x281   :  { %319 = vrcp.f32 %v228_v33 }
 0x28b   :  { %v320_v35 = vpop.eup %319 }
 0x28c   :  { %v234_v36 = vrot.slane %v320_v35, %v233_v34  ;;  %v241_v38 = vrot.slane %v320_v35, %v240_v37 }
 0x28e   :  { %236 = vbcast.lane.b32.xlu1 %v234_v36, 256 }
 0x292   :  { %243 = vbcast.lane.b32.xlu1 %v241_v38, 256 }
 0x300   :  { %v237_v43 = vpop.permute.xlu1 %236 }
 0x301   :  { %v253_v44 = vrot.slane %v237_v43, %v252_v42 }
 0x303   :  { %v263_v45 = vmul.f32 %v253_v44, %v411_v0 }
 0x304   :  { %v244_v46 = vpop.permute.xlu1 %243 }
 0x305   :  { %265 = vst [vmem:[#allocation5] sm:$0xff] %v263_v45  ;;  %v260_v47 = vrot.slane %v244_v46, %v252_v42 }
 0x307   :  { %v264_v48 = vmul.f32 %v260_v47, %v413_v1 }
 0x309   :  { %266 = vst [vmem:[#allocation5 + $0x8] sm:$0xff] %v264_v48 }
 0x30a   :  { %354 = shalt.err (!%p351_p12)
}
 0x30b   :  { %s355_s5 = scalar_lea.hbm %s452_s3, 256 }
 0x30c   :  { %p356_p13 = scmp.ne.s32.totalorder %s452_s3, %s355_s5  ;;  %p359_p0 = scmp.lt.u32.totalorder %s355_s5, %s452_s3 }
 0x30e   :  { %p361_p1 = pnand %p359_p0, %p356_p13 }
 0x310   :  { %364 = shalt.err (!%p361_p1)
}
 0x311   :  { %278 = dma.vmem_to_hbm [thread:$0]  %s273_s28, 256, %s452_s3, [#allocation4], %s370_s22, %s370_s22, %s371_s23  }
 0x312   :  { %367 = dma.done.wait [#allocation4], 256  }
 0x313   :  { %368 = vsyncadd [#allocation4], 4294967040 }
 0x314   :  { %282 = vsyncpa [#allocation3], 1 }
 0x315   :  { %283 = vsyncpa [#allocation4], 1 }

</bundles_post_ra>
